<compile_context>
chip_gen: v7x
topology: tpu7x:2x2x1
jax: 0.10.0
libtpu: 0.0.40
codegen_flags: <defaults>
</compile_context>

<pallas_src>
import jax
import jax.numpy as jnp
from jax.experimental import pallas as pl
from jax.experimental.pallas import tpu as pltpu


# ----------------------------------------------------------------------------
# Kernel: fused conv1 -> conv2 on a block of BB images.
# ----------------------------------------------------------------------------
def _fused_conv_kernel(x_ref, w1_ref, b1_ref, w2_ref, b2_ref, o_ref,
                       xp1_ref, xp2_ref):
    """Shapes (per grid step):
      x_ref  : (BB, H, W*C1)         row-packed input
      w1_ref : (3, W*C1, W*CO1)      banded conv1 weights, one slab per kh tap
      b1_ref : (1, W*CO1)            conv1 bias tiled along W
      w2_ref : (3, W*CO1, W*CO2)     banded conv2 weights
      b2_ref : (1, W*CO2)            conv2 bias tiled along W
      o_ref  : (BB, H, W*CO2)        row-packed output (lane dense)
      xp1_ref: (BB, H+2, W*C1)       VMEM scratch: height-padded conv1 input
      xp2_ref: (BB, H+2, W*CO1)      VMEM scratch: height-padded conv2 input
    """
    BB, H, _ = x_ref.shape
    M = BB * H
    K1 = w1_ref.shape[1]
    K2 = w2_ref.shape[1]

    # ---- conv1: height padding in VMEM, width padding folded into weights ----
    xp1_ref[...] = jnp.zeros_like(xp1_ref)
    xp1_ref[:, 1:H + 1, :] = x_ref[...]

    acc1 = jnp.zeros((M, w1_ref.shape[2]), jnp.float32)
    for kh in range(3):                                   # unrolled: 3 MXU matmuls
        slab = xp1_ref[:, kh:kh + H, :].reshape(M, K1)
        acc1 += jnp.dot(slab, w1_ref[kh], preferred_element_type=jnp.float32)
    h1 = acc1 + b1_ref[...]                               # (M, W*CO1) stays on-chip

    # ---- conv2: input is the VMEM-resident conv1 output ----
    xp2_ref[...] = jnp.zeros_like(xp2_ref)
    xp2_ref[:, 1:H + 1, :] = h1.reshape(BB, H, K2)

    acc2 = jnp.zeros((M, w2_ref.shape[2]), jnp.float32)
    for kh in range(3):
        slab = xp2_ref[:, kh:kh + H, :].reshape(M, K2)
        acc2 += jnp.dot(slab, w2_ref[kh], preferred_element_type=jnp.float32)
    h2 = acc2 + b2_ref[...]                               # (M, W*CO2) — lane dense

    o_ref[...] = h2.reshape(o_ref.shape).astype(o_ref.dtype)


# ----------------------------------------------------------------------------
# Parameter preprocessing (one-time, outside the jitted forward).
# ----------------------------------------------------------------------------
def _banded_row_weights(w, width):
    """(KH, KW, Cin, Cout) conv weights -> (KH, width*Cin, width*Cout) banded mats.

    big[kh, c*Cin+ci, o*Cout+co] = w[kh, c + pad - o, ci, co] if 0<=c+pad-o<KW else 0,
    so that (row_packed_input_row @ big[kh]) performs the kw/ci contraction of a
    stride-1 'SAME' conv for one kh tap over a whole image row (width-wise zero
    padding is absorbed by the band clipping at the edges).
    """
    KH, KW, Cin, Cout = w.shape
    pad = (KW - 1) // 2
    c_idx = jnp.arange(width)[:, None]          # input column
    o_idx = jnp.arange(width)[None, :]          # output column
    kw = c_idx + pad - o_idx                    # (width, width)
    valid = (kw >= 0) & (kw < KW)
    big = w[:, jnp.clip(kw, 0, KW - 1)]         # (KH, width, width, Cin, Cout)
    big = jnp.where(valid[None, :, :, None, None], big, 0.0)
    big = jnp.transpose(big, (0, 1, 3, 2, 4))   # (KH, width, Cin, width, Cout)
    return big.reshape(KH, width * Cin, width * Cout)


def prepare_params(w1, b1, w2, b2, width):
    """Build banded weight matrices and W-tiled biases (done once)."""
    w1b = _banded_row_weights(w1, width)                      # (3, W*3,  W*8)
    w2b = _banded_row_weights(w2, width)                      # (3, W*8,  W*16)
    b1t = jnp.tile(b1, width).reshape(1, width * b1.shape[0])  # (1, W*8)
    b2t = jnp.tile(b2, width).reshape(1, width * b2.shape[0])  # (1, W*16)
    return w1b, b1t, w2b, b2t


# ----------------------------------------------------------------------------
# Forward pass.
# ----------------------------------------------------------------------------
def _batch_block(batch):
    """Batch elements per grid step: 2 'parallel' steps on 2-TensorCore v7x,
    a single grid step on 1-TC chips (v5e / v6e)."""
    try:
        kind = jax.devices()[0].device_kind.lower()
    except Exception:
        kind = ""
    if "v7" in kind and batch % 2 == 0:
        return batch // 2
    return batch


@jax.jit
def model_forward(x_nchw, w1b, b1t, w2b, b2t):
    """conv1 -> conv2 (both 3x3, stride 1, padding 1). NCHW in / NCHW out."""
    B, C1, H, W = x_nchw.shape
    CO2 = b2t.shape[1] // W
    BB = _batch_block(B)

    # NCHW -> row-packed (B, H, W*C1): lane dim is a whole image row.
    x_rows = jnp.transpose(x_nchw, (0, 2, 3, 1)).reshape(B, H, W * C1)

    out_rows = pl.pallas_call(
        _fused_conv_kernel,
        out_shape=jax.ShapeDtypeStruct((B, H, W * CO2), x_nchw.dtype),
        grid=(B // BB,),
        in_specs=[
            pl.BlockSpec((BB, H, W * C1), lambda i: (i, 0, 0)),
            pl.BlockSpec(w1b.shape, lambda i: (0, 0, 0)),
            pl.BlockSpec(b1t.shape, lambda i: (0, 0)),
            pl.BlockSpec(w2b.shape, lambda i: (0, 0, 0)),
            pl.BlockSpec(b2t.shape, lambda i: (0, 0)),
        ],
        out_specs=pl.BlockSpec((BB, H, W * CO2), lambda i: (i, 0, 0)),
        scratch_shapes=[
            pltpu.VMEM((BB, H + 2, w1b.shape[1]), jnp.float32),
            pltpu.VMEM((BB, H + 2, w2b.shape[1]), jnp.float32),
        ],
        compiler_params=pltpu.CompilerParams(
            dimension_semantics=("parallel",)),
    )(x_rows, w1b, b1t, w2b, b2t)

    # row-packed (B, H, W*CO2) -> NCHW.
    return out_rows.reshape(B, H, W, CO2).transpose(0, 3, 1, 2)


# ----------------------------------------------------------------------------
# Parameter init (deterministic, matching the PyTorch module's shapes).
# ----------------------------------------------------------------------------
def init_params(key):
    """conv1: (3,3,3,8)/(8,), conv2: (3,3,8,16)/(16,) in HWIO layout.
    (Synthetic deterministic uniform weights of kaiming-uniform-like scale.)"""
    k1, k2, k3, k4 = jax.random.split(key, 4)
    fan_in1 = 3 * 3 * 3
    fan_in2 = 8 * 3 * 3
    bound1 = 1.0 / (fan_in1 ** 0.5)
    bound2 = 1.0 / (fan_in2 ** 0.5)
    w1 = jax.random.uniform(k1, (3, 3, 3, 8), jnp.float32, -bound1, bound1)
    b1 = jax.random.uniform(k2, (8,), jnp.float32, -bound1, bound1)
    w2 = jax.random.uniform(k3, (3, 3, 8, 16), jnp.float32, -bound2, bound2)
    b2 = jax.random.uniform(k4, (16,), jnp.float32, -bound2, bound2)
    return w1, b1, w2, b2


def _reference_forward(x_nchw, w1, b1, w2, b2):
    """Pure-JAX reference (lax conv, full f32 precision)."""
    def conv(x, w, b):
        out = jax.lax.conv_general_dilated(
            x, w, window_strides=(1, 1), padding="SAME",
            dimension_numbers=("NCHW", "HWIO", "NCHW"),
            precision=jax.lax.Precision.HIGHEST)
        return out + b.reshape(1, -1, 1, 1)
    return conv(conv(x_nchw, w1, b1), w2, b2)


if __name__ == "__main__":
    key = jax.random.PRNGKey(0)
    kx, kp = jax.random.split(key)

    # Small shapes consistent with the module: batch=2, in_channels=3, spatial=16.
    x = jax.random.normal(kx, (2, 3, 16, 16), dtype=jnp.float32)
    w1, b1, w2, b2 = init_params(kp)

    # One-time weight preprocessing (kept out of the jitted hot path).
    w1b, b1t, w2b, b2t = prepare_params(w1, b1, w2, b2, x.shape[3])

    out = model_forward(x, w1b, b1t, w2b, b2t)
    out = jax.block_until_ready(out)

    assert out.shape == (2, 16, 16, 16), out.shape

    ref = _reference_forward(x, w1, b1, w2, b2)
    assert jnp.allclose(out, ref, atol=1e-4, rtol=1e-4), (
        "mismatch vs reference conv, max abs err = "
        f"{float(jnp.max(jnp.abs(out - ref)))}")

    print("KERNEL_OK")
</pallas_src>

<mosaic_0001>
module attributes {stable_mosaic.version = 11 : i64} {
  func.func @_fused_conv_kernel(%arg0: i32, %arg1: memref<2x16x48xf32, #tpu.memory_space<vmem>>, %arg2: memref<3x48x128xf32, #tpu.memory_space<vmem>>, %arg3: memref<1x128xf32, #tpu.memory_space<vmem>>, %arg4: memref<3x128x256xf32, #tpu.memory_space<vmem>>, %arg5: memref<1x256xf32, #tpu.memory_space<vmem>>, %arg6: memref<2x16x256xf32, #tpu.memory_space<vmem>>, %arg7: memref<2x18x48xf32, #tpu.memory_space<vmem>>, %arg8: memref<2x18x128xf32, #tpu.memory_space<vmem>>) attributes {dimension_semantics = [#tpu.dimension_semantics<parallel>], iteration_bounds = array<i64: 1>, scalar_prefetch = 0 : i64, scratch_operands = 2 : i64, tpu.core_type = #tpu.core_type<tc>, window_params = [{transform_indices = @transform_0, window_bounds = array<i64: 2, 16, 48>}, {pipeline_mode = #tpu.pipeline_mode<synchronous>, transform_indices = @transform_1, window_bounds = array<i64: 3, 48, 128>}, {pipeline_mode = #tpu.pipeline_mode<synchronous>, transform_indices = @transform_2, window_bounds = array<i64: 1, 128>}, {pipeline_mode = #tpu.pipeline_mode<synchronous>, transform_indices = @transform_3, window_bounds = array<i64: 3, 128, 256>}, {pipeline_mode = #tpu.pipeline_mode<synchronous>, transform_indices = @transform_4, window_bounds = array<i64: 1, 256>}, {transform_indices = @transform_5, window_bounds = array<i64: 2, 16, 256>}]} {
    %cst = arith.constant 0.000000e+00 : f32
    %0 = vector.broadcast %cst : f32 to vector<2x18x48xf32>
    %c0 = arith.constant 0 : index
    %c0_0 = arith.constant 0 : index
    %c0_1 = arith.constant 0 : index
    %1 = vector.load %arg7[%c0, %c0_0, %c0_1] : memref<2x18x48xf32, #tpu.memory_space<vmem>>, vector<2x18x48xf32>
    tpu.vector_store %arg7[%c0, %c0_0, %c0_1], %0 {strides = array<i32>} : memref<2x18x48xf32, #tpu.memory_space<vmem>>, vector<2x18x48xf32>,
    %c0_2 = arith.constant 0 : index
    %c0_3 = arith.constant 0 : index
    %c0_4 = arith.constant 0 : index
    %2 = vector.load %arg1[%c0_2, %c0_3, %c0_4] : memref<2x16x48xf32, #tpu.memory_space<vmem>>, vector<2x16x48xf32>
    %c0_5 = arith.constant 0 : index
    %c1 = arith.constant 1 : index
    %c0_6 = arith.constant 0 : index
    %3 = vector.load %arg7[%c0_5, %c1, %c0_6] : memref<2x18x48xf32, #tpu.memory_space<vmem>>, vector<2x16x48xf32>
    tpu.vector_store %arg7[%c0_5, %c1, %c0_6], %2 {strides = array<i32>} : memref<2x18x48xf32, #tpu.memory_space<vmem>>, vector<2x16x48xf32>,
    %cst_7 = arith.constant 0.000000e+00 : f32
    %4 = vector.broadcast %cst_7 : f32 to vector<32x128xf32>
    %c0_8 = arith.constant 0 : index
    %c0_9 = arith.constant 0 : index
    %c0_10 = arith.constant 0 : index
    %5 = vector.load %arg7[%c0_8, %c0_9, %c0_10] : memref<2x18x48xf32, #tpu.memory_space<vmem>>, vector<2x16x48xf32>
    %6 = vector.shape_cast %5 : vector<2x16x48xf32> to vector<32x48xf32>
    %c0_11 = arith.constant 0 : index
    %c0_12 = arith.constant 0 : index
    %c0_13 = arith.constant 0 : index
    %7 = vector.load %arg2[%c0_11, %c0_12, %c0_13] : memref<3x48x128xf32, #tpu.memory_space<vmem>>, vector<1x48x128xf32>
    %8 = vector.shape_cast %7 : vector<1x48x128xf32> to vector<48x128xf32>
    %cst_14 = arith.constant dense<0.000000e+00> : vector<32x128xf32>
    %9 = tpu.matmul %6, %8, %cst_14 {dimension_numbers = #tpu.dot_dimension_numbers<[1], [0], [0], [1], [0, 0, 1, 1], [], []>} : vector<32x48xf32>, vector<48x128xf32>, vector<32x128xf32> -> vector<32x128xf32>
    %10 = arith.addf %4, %9 : vector<32x128xf32>
    %c0_15 = arith.constant 0 : index
    %c1_16 = arith.constant 1 : index
    %c0_17 = arith.constant 0 : index
    %11 = vector.load %arg7[%c0_15, %c1_16, %c0_17] : memref<2x18x48xf32, #tpu.memory_space<vmem>>, vector<2x16x48xf32>
    %12 = vector.shape_cast %11 : vector<2x16x48xf32> to vector<32x48xf32>
    %c1_18 = arith.constant 1 : index
    %c0_19 = arith.constant 0 : index
    %c0_20 = arith.constant 0 : index
    %13 = vector.load %arg2[%c1_18, %c0_19, %c0_20] : memref<3x48x128xf32, #tpu.memory_space<vmem>>, vector<1x48x128xf32>
    %14 = vector.shape_cast %13 : vector<1x48x128xf32> to vector<48x128xf32>
    %cst_21 = arith.constant dense<0.000000e+00> : vector<32x128xf32>
    %15 = tpu.matmul %12, %14, %cst_21 {dimension_numbers = #tpu.dot_dimension_numbers<[1], [0], [0], [1], [0, 0, 1, 1], [], []>} : vector<32x48xf32>, vector<48x128xf32>, vector<32x128xf32> -> vector<32x128xf32>
    %16 = arith.addf %10, %15 : vector<32x128xf32>
    %c0_22 = arith.constant 0 : index
    %c2 = arith.constant 2 : index
    %c0_23 = arith.constant 0 : index
    %17 = vector.load %arg7[%c0_22, %c2, %c0_23] : memref<2x18x48xf32, #tpu.memory_space<vmem>>, vector<2x16x48xf32>
    %18 = vector.shape_cast %17 : vector<2x16x48xf32> to vector<32x48xf32>
    %c2_24 = arith.constant 2 : index
    %c0_25 = arith.constant 0 : index
    %c0_26 = arith.constant 0 : index
    %19 = vector.load %arg2[%c2_24, %c0_25, %c0_26] : memref<3x48x128xf32, #tpu.memory_space<vmem>>, vector<1x48x128xf32>
    %20 = vector.shape_cast %19 : vector<1x48x128xf32> to vector<48x128xf32>
    %cst_27 = arith.constant dense<0.000000e+00> : vector<32x128xf32>
    %21 = tpu.matmul %18, %20, %cst_27 {dimension_numbers = #tpu.dot_dimension_numbers<[1], [0], [0], [1], [0, 0, 1, 1], [], []>} : vector<32x48xf32>, vector<48x128xf32>, vector<32x128xf32> -> vector<32x128xf32>
    %22 = arith.addf %16, %21 : vector<32x128xf32>
    %c0_28 = arith.constant 0 : index
    %c0_29 = arith.constant 0 : index
    %23 = vector.load %arg3[%c0_28, %c0_29] : memref<1x128xf32, #tpu.memory_space<vmem>>, vector<1x128xf32>
    %24 = vector.broadcast %23 : vector<1x128xf32> to vector<32x128xf32>
    %25 = arith.addf %22, %24 : vector<32x128xf32>
    %cst_30 = arith.constant 0.000000e+00 : f32
    %26 = vector.broadcast %cst_30 : f32 to vector<2x18x128xf32>
    %c0_31 = arith.constant 0 : index
    %c0_32 = arith.constant 0 : index
    %c0_33 = arith.constant 0 : index
    %27 = vector.load %arg8[%c0_31, %c0_32, %c0_33] : memref<2x18x128xf32, #tpu.memory_space<vmem>>, vector<2x18x128xf32>
    tpu.vector_store %arg8[%c0_31, %c0_32, %c0_33], %26 {strides = array<i32>} : memref<2x18x128xf32, #tpu.memory_space<vmem>>, vector<2x18x128xf32>,
    %28 = vector.shape_cast %25 : vector<32x128xf32> to vector<2x16x128xf32>
    %c0_34 = arith.constant 0 : index
    %c1_35 = arith.constant 1 : index
    %c0_36 = arith.constant 0 : index
    %29 = vector.load %arg8[%c0_34, %c1_35, %c0_36] : memref<2x18x128xf32, #tpu.memory_space<vmem>>, vector<2x16x128xf32>
    tpu.vector_store %arg8[%c0_34, %c1_35, %c0_36], %28 {strides = array<i32>} : memref<2x18x128xf32, #tpu.memory_space<vmem>>, vector<2x16x128xf32>,
    %cst_37 = arith.constant 0.000000e+00 : f32
    %30 = vector.broadcast %cst_37 : f32 to vector<32x256xf32>
    %c0_38 = arith.constant 0 : index
    %c0_39 = arith.constant 0 : index
    %c0_40 = arith.constant 0 : index
    %31 = vector.load %arg8[%c0_38, %c0_39, %c0_40] : memref<2x18x128xf32, #tpu.memory_space<vmem>>, vector<2x16x128xf32>
    %32 = vector.shape_cast %31 : vector<2x16x128xf32> to vector<32x128xf32>
    %c0_41 = arith.constant 0 : index
    %c0_42 = arith.constant 0 : index
    %c0_43 = arith.constant 0 : index
    %33 = vector.load %arg4[%c0_41, %c0_42, %c0_43] : memref<3x128x256xf32, #tpu.memory_space<vmem>>, vector<1x128x256xf32>
    %34 = vector.shape_cast %33 : vector<1x128x256xf32> to vector<128x256xf32>
    %cst_44 = arith.constant dense<0.000000e+00> : vector<32x256xf32>
    %35 = tpu.matmul %32, %34, %cst_44 {dimension_numbers = #tpu.dot_dimension_numbers<[1], [0], [0], [1], [0, 0, 1, 1], [], []>} : vector<32x128xf32>, vector<128x256xf32>, vector<32x256xf32> -> vector<32x256xf32>
    %36 = arith.addf %30, %35 : vector<32x256xf32>
    %c0_45 = arith.constant 0 : index
    %c1_46 = arith.constant 1 : index
    %c0_47 = arith.constant 0 : index
    %37 = vector.load %arg8[%c0_45, %c1_46, %c0_47] : memref<2x18x128xf32, #tpu.memory_space<vmem>>, vector<2x16x128xf32>
    %38 = vector.shape_cast %37 : vector<2x16x128xf32> to vector<32x128xf32>
    %c1_48 = arith.constant 1 : index
    %c0_49 = arith.constant 0 : index
    %c0_50 = arith.constant 0 : index
    %39 = vector.load %arg4[%c1_48, %c0_49, %c0_50] : memref<3x128x256xf32, #tpu.memory_space<vmem>>, vector<1x128x256xf32>
    %40 = vector.shape_cast %39 : vector<1x128x256xf32> to vector<128x256xf32>
    %cst_51 = arith.constant dense<0.000000e+00> : vector<32x256xf32>
    %41 = tpu.matmul %38, %40, %cst_51 {dimension_numbers = #tpu.dot_dimension_numbers<[1], [0], [0], [1], [0, 0, 1, 1], [], []>} : vector<32x128xf32>, vector<128x256xf32>, vector<32x256xf32> -> vector<32x256xf32>
    %42 = arith.addf %36, %41 : vector<32x256xf32>
    %c0_52 = arith.constant 0 : index
    %c2_53 = arith.constant 2 : index
    %c0_54 = arith.constant 0 : index
    %43 = vector.load %arg8[%c0_52, %c2_53, %c0_54] : memref<2x18x128xf32, #tpu.memory_space<vmem>>, vector<2x16x128xf32>
    %44 = vector.shape_cast %43 : vector<2x16x128xf32> to vector<32x128xf32>
    %c2_55 = arith.constant 2 : index
    %c0_56 = arith.constant 0 : index
    %c0_57 = arith.constant 0 : index
    %45 = vector.load %arg4[%c2_55, %c0_56, %c0_57] : memref<3x128x256xf32, #tpu.memory_space<vmem>>, vector<1x128x256xf32>
    %46 = vector.shape_cast %45 : vector<1x128x256xf32> to vector<128x256xf32>
    %cst_58 = arith.constant dense<0.000000e+00> : vector<32x256xf32>
    %47 = tpu.matmul %44, %46, %cst_58 {dimension_numbers = #tpu.dot_dimension_numbers<[1], [0], [0], [1], [0, 0, 1, 1], [], []>} : vector<32x128xf32>, vector<128x256xf32>, vector<32x256xf32> -> vector<32x256xf32>
    %48 = arith.addf %42, %47 : vector<32x256xf32>
    %c0_59 = arith.constant 0 : index
    %c0_60 = arith.constant 0 : index
    %49 = vector.load %arg5[%c0_59, %c0_60] : memref<1x256xf32, #tpu.memory_space<vmem>>, vector<1x256xf32>
    %50 = vector.broadcast %49 : vector<1x256xf32> to vector<32x256xf32>
    %51 = arith.addf %48, %50 : vector<32x256xf32>
    %52 = vector.shape_cast %51 : vector<32x256xf32> to vector<2x16x256xf32>
    %c0_61 = arith.constant 0 : index
    %c0_62 = arith.constant 0 : index
    %c0_63 = arith.constant 0 : index
    %53 = vector.load %arg6[%c0_61, %c0_62, %c0_63] : memref<2x16x256xf32, #tpu.memory_space<vmem>>, vector<2x16x256xf32>
    tpu.vector_store %arg6[%c0_61, %c0_62, %c0_63], %52 {strides = array<i32>} : memref<2x16x256xf32, #tpu.memory_space<vmem>>, vector<2x16x256xf32>,
    return
  }
  func.func @transform_0(%arg0: i32) -> (i32, i32, i32) {
    %c0_i32 = arith.constant 0 : i32
    %c0_i32_0 = arith.constant 0 : i32
    %c0_i32_1 = arith.constant 0 : i32
    return %arg0, %c0_i32, %c0_i32_0 : i32, i32, i32
  }
  func.func @transform_1(%arg0: i32) -> (i32, i32, i32) {
    %c0_i32 = arith.constant 0 : i32
    %c0_i32_0 = arith.constant 0 : i32
    %c0_i32_1 = arith.constant 0 : i32
    %c0_i32_2 = arith.constant 0 : i32
    return %c0_i32, %c0_i32_0, %c0_i32_1 : i32, i32, i32
  }
  func.func @transform_2(%arg0: i32) -> (i32, i32) {
    %c0_i32 = arith.constant 0 : i32
    %c0_i32_0 = arith.constant 0 : i32
    %c0_i32_1 = arith.constant 0 : i32
    return %c0_i32, %c0_i32_0 : i32, i32
  }
  func.func @transform_3(%arg0: i32) -> (i32, i32, i32) {
    %c0_i32 = arith.constant 0 : i32
    %c0_i32_0 = arith.constant 0 : i32
    %c0_i32_1 = arith.constant 0 : i32
    %c0_i32_2 = arith.constant 0 : i32
    return %c0_i32, %c0_i32_0, %c0_i32_1 : i32, i32, i32
  }
  func.func @transform_4(%arg0: i32) -> (i32, i32) {
    %c0_i32 = arith.constant 0 : i32
    %c0_i32_0 = arith.constant 0 : i32
    %c0_i32_1 = arith.constant 0 : i32
    return %c0_i32, %c0_i32_0 : i32, i32
  }
  func.func @transform_5(%arg0: i32) -> (i32, i32, i32) {
    %c0_i32 = arith.constant 0 : i32
    %c0_i32_0 = arith.constant 0 : i32
    %c0_i32_1 = arith.constant 0 : i32
    return %arg0, %c0_i32, %c0_i32_0 : i32, i32, i32
  }
}

</mosaic_0001>

<bundles_post_ra>
// kernel: model_forward.1
= control target key start
LH: loop header
LB: loop body
LE: loop exit
PB: predicated region body
PF: predicated region fallthrough
CT: control target
= control target key end

     0   :  { %10 = vsyncpa [#allocation5], 0  ;;  %s1109_s18 = smov [#allocation4]   ;;  %s1295_s0 = inlined_call_operand.vmem [shape: f32[2,16,48], index: 0, kind: input, shape index: {}]   ;;  %s1296_s1 = inlined_call_operand.vmem [shape: f32[3,48,128], index: 1, kind: input, shape index: {}]   ;;  %s1297_s2 = inlined_call_operand.vmem [shape: f32[1,128], index: 2, kind: input, shape index: {}]   ;;  %s1298_s3 = inlined_call_operand.hbm [shape: f32[3,128,256], index: 3, kind: input, shape index: {}]   ;;  %s1299_s4 = inlined_call_operand.vmem [shape: f32[1,256], index: 4, kind: input, shape index: {}]   ;;  %s1300_s5 = inlined_call_operand.vmem [shape: f32[2,16,256], index: 5, kind: output, shape index: {}]  }
   0x1   :  { %s22_s19 = sshll.u32 %s1109_s18, 4  ;;  %s1085_s22 = scalar_lea.hbm %s1298_s3, 12288  ;;  %s23_s19 = int_to_ptr.vmem [resolvable:$true] %s22_s19 }
   0x2   :  { %p1086_p0 = scmp.ne.s32.totalorder %s1298_s3, %s1085_s22  ;;  %p1089_p1 = scmp.lt.u32.totalorder %s1085_s22, %s1298_s3 }
   0x4   :  { %p1091_p2 = pnand %p1089_p1, %p1086_p0 }
   0x6   :  { %1094 = shalt.err (!%p1091_p2)
}
   0x7   :  { %s1095_s27 = scalar_lea.vmem %s23_s19, 12288  ;;  %p1100_p4 = scmp.lt.s32.totalorder %s23_s19, %s23_s19 }
   0x8   :  { %p1096_p3 = scmp.ne.s32.totalorder %s23_s19, %s1095_s27  ;;  %p1101_p5 = scmp.lt.s32.totalorder %s1095_s27, %s1095_s27 }
   0xa   :  { %p1102_p6 = por %p1101_p5, %p1100_p4 }
   0xc   :  { %p1103_p7 = pnand %p1102_p6, %p1096_p3 }
   0xe   :  { %1106 = shalt.err (!%p1103_p7)
}
   0xf   :  { %s1110_s28 = smov 256   ;;  %s1111_s29 = smov 16  }
  0x10   :  { %28 = dma.hbm_to_vmem [thread:$0]  %s1298_s3, 12288, %s23_s19, [#allocation5], %s1110_s28, %s1110_s28, %s1111_s29  }
  0x11   :  { %1107 = dma.done.wait [#allocation5], 12288  }
  0x12   :  { %1108 = vsyncadd [#allocation5], 4294955008  ;;  %vm34_vm0 = vcmask 392192   ;;  %vm37_vm1 = vcmask 386048   ;;  %v1112_v0 = vmov 0.0   ;;  %v816_v1 = vld [vmem:[%s1296_s1 + $0x30] sm:$0xff] }
  0x13   :  { %35 = vst.msk [vmem:[#allocation2] sm:$0xff] %vm34_vm0, %v1112_v0  ;;  %36 = vst.msk [vmem:[#allocation2 + $0x8] sm:$0xff] %vm34_vm0, %v1112_v0  ;;  %624 = vmatprep.mubr.f32.mxu1 %v1112_v0  ;;  %v817_v2 = vld [vmem:[%s1296_s1 + $0x38] sm:$0xff]  ;;  %v818_v3 = vld [vmem:[%s1296_s1 + $0x40] sm:$0xff] }
  0x14   :  { %39 = vst.msk [vmem:[#allocation2 + $0x18] sm:$0xff] %vm34_vm0, %v1112_v0  ;;  %40 = vst.msk [vmem:[#allocation2 + $0x20] sm:$0xff] %vm34_vm0, %v1112_v0  ;;  %v925_v4 = vpack.c.bf16 %v817_v2, %v816_v1  ;;  %v819_v5 = vld [vmem:[%s1296_s1 + $0x48] sm:$0xff]  ;;  %v820_v7 = vld [vmem:[%s1296_s1 + $0x50] sm:$0xff] }
  0x15   :  { %388 = vst [vmem:[#allocation3] sm:$0xff] %v1112_v0  ;;  %389 = vst [vmem:[#allocation3 + $0x8] sm:$0xff] %v1112_v0  ;;  %v929_v6 = vpack.c.bf16 %v819_v5, %v818_v3  ;;  %v821_v8 = vld [vmem:[%s1296_s1 + $0x58] sm:$0xff]  ;;  %v42_v9 = vld [vmem:[%s1295_s0] sm:$0xff] }
  0x16   :  { %390 = vst [vmem:[#allocation3 + $0x10] sm:$0x3] %v1112_v0  ;;  %391 = vst [vmem:[#allocation3 + $0x18] sm:$0xff] %v1112_v0  ;;  %926 = vmatprep.subr.bf16.mxu0 %v925_v4  ;;  %v43_v10 = vld [vmem:[%s1295_s0 + $0x8] sm:$0xff]  ;;  %v44_v11 = vld [vmem:[%s1295_s0 + $0x10] sm:$0xff]  ;;  %v933_v12 = vpack.c.bf16 %v821_v8, %v820_v7 }
  0x17   :  { %392 = vst [vmem:[#allocation3 + $0x20] sm:$0xff] %v1112_v0  ;;  %393 = vst [vmem:[#allocation3 + $0x28] sm:$0x3] %v1112_v0  ;;  %928 = vmatpush3.bf16.msra.mxu0 %v925_v4  ;;  %v45_v13 = vld [vmem:[%s1295_s0 + $0x18] sm:$0xff]  ;;  %v54_v14 = vld [vmem:[%s1296_s1] sm:$0xff] }
  0x18   :  { %38 = vst.msk [vmem:[#allocation2 + $0x10] sm:$0x3] %vm37_vm1, %v1112_v0  ;;  %41 = vst.msk [vmem:[#allocation2 + $0x28] sm:$0x3] %vm37_vm1, %v1112_v0  ;;  %930 = vmatprep.subr.bf16.mxu0 %v929_v6  ;;  %v55_v15 = vld [vmem:[%s1296_s1 + $0x8] sm:$0xff]  ;;  %v405_v17 = vld [vmem:[#allocation4 + $0x18] sm:$0xff] }
  0x19   :  { %46 = vst.msk [vmem:[#allocation2 + $0x1] sm:$0xff] %vm34_vm0, %v42_v9  ;;  %47 = vst.msk [vmem:[#allocation2 + $0x9] sm:$0xff] %vm34_vm0, %v43_v10  ;;  %v403_v16 = vld [vmem:[#allocation4 + $0x8] sm:$0xff]  ;;  %v402_v19 = vld [vmem:[#allocation4] sm:$0xff]  ;;  %v937_v20 = vpack.c.bf16 %v55_v15, %v54_v14 }
  0x1a   :  { %48 = vst.msk [vmem:[#allocation2 + $0x19] sm:$0xff] %vm34_vm0, %v44_v11  ;;  %49 = vst.msk [vmem:[#allocation2 + $0x21] sm:$0xff] %vm34_vm0, %v45_v13  ;;  %v993_v18 = vpack.c.bf16 %v405_v17, %v403_v16  ;;  %v404_v21 = vld [vmem:[#allocation4 + $0x10] sm:$0xff]  ;;  %v57_v24 = vld [vmem:[%s1296_s1 + $0x18] sm:$0xff] }
  0x1b   :  { %932 = vmatpush3.bf16.msra.mxu0 %v929_v6  ;;  %v56_v23 = vld [vmem:[%s1296_s1 + $0x10] sm:$0xff]  ;;  %v995_v25 = vpack.c.bf16 %v404_v21, %v402_v19  ;;  %v407_v27 = vld [vmem:[#allocation4 + $0x28] sm:$0xff]  ;;  %v58_v30 = vld [vmem:[%s1296_s1 + $0x20] sm:$0xff] }
  0x1c   :  { %934 = vmatprep.subr.bf16.mxu0 %v933_v12  ;;  %994 = vmatprep.subr.bf16.mxu1 %v993_v18  ;;  %v941_v28 = vpack.c.bf16 %v57_v24, %v56_v23  ;;  %v59_v31 = vld [vmem:[%s1296_s1 + $0x28] sm:$0xff]  ;;  %v409_v32 = vld [vmem:[#allocation4 + $0x38] sm:$0xff]  ;;  %v406_v34 = vld [vmem:[#allocation4 + $0x20] sm:$0xff] }
  0x1d   :  { %996 = vmatpush1.bf16.msra.mxu1 %v995_v25  ;;  %v997_v33 = vpack.c.bf16 %v409_v32, %v407_v27  ;;  %v408_v35 = vld [vmem:[#allocation4 + $0x30] sm:$0xff]  ;;  %v411_v38 = vld [vmem:[#allocation4 + $0x48] sm:$0xff]  ;;  %v945_v39 = vpack.c.bf16 %v59_v31, %v58_v30  ;;  %v830_v41 = vld [vmem:[%s1296_s1 + $0x60] sm:$0xff] }
  0x1e   :  { %v999_v37 = vpack.c.bf16 %v408_v35, %v406_v34  ;;  %v413_v42 = vld [vmem:[#allocation4 + $0x58] sm:$0xff]  ;;  %v831_v43 = vld [vmem:[%s1296_s1 + $0x68] sm:$0xff]  ;;  %v410_v45 = vld [vmem:[#allocation4 + $0x40] sm:$0xff] }
  0x1f   :  { %936 = vmatpush3.bf16.msra.mxu0 %v933_v12  ;;  %998 = vmatprep.subr.bf16.mxu1 %v997_v33  ;;  %v1001_v44 = vpack.c.bf16 %v413_v42, %v411_v38  ;;  %v412_v46 = vld [vmem:[#allocation4 + $0x50] sm:$0xff]  ;;  %v415_v48 = vld [vmem:[#allocation4 + $0x68] sm:$0xff]  ;;  %v417_v49 = vld [vmem:[#allocation4 + $0x78] sm:$0xff]  ;;  %v949_v52 = vpack.c.bf16 %v831_v43, %v830_v41 }
  0x20   :  { %v60_v22 = vld [vmem:[#allocation2 + $0x1] sm:$0xff]  ;;  %v61_v26 = vld [vmem:[#allocation2 + $0x9] sm:$0xff]  ;;  %938 = vmatprep.subr.bf16.mxu0 %v937_v20  ;;  %v1003_v47 = vpack.c.bf16 %v412_v46, %v410_v45  ;;  %v1005_v50 = vpack.c.bf16 %v417_v49, %v415_v48  ;;  %v833_v55 = vld [vmem:[%s1296_s1 + $0x78] sm:$0xff] }
  0x21   :  { %883 = vmatprep.mubr.msk.f32.mxu0 %vm34_vm0, %v60_v22  ;;  %v62_v29 = vld [vmem:[#allocation2 + $0x19] sm:$0xff]  ;;  %v63_v36 = vld [vmem:[#allocation2 + $0x21] sm:$0xff]  ;;  %1000 = vmatpush1.bf16.msra.mxu1 %v999_v37  ;;  %v832_v53 = vld [vmem:[%s1296_s1 + $0x70] sm:$0xff] }
  0x22   :  { %884 = vmatmul.mubr.msk.f32.vlgmr.msra.gmra.mrb[0].mxu0 %vm34_vm0, %v61_v26  ;;  %v50_v40 = vld [vmem:[#allocation2] sm:$0xff]  ;;  %1002 = vmatprep.subr.bf16.mxu1 %v1001_v44  ;;  %v416_v54 = vld [vmem:[#allocation4 + $0x70] sm:$0xff]  ;;  %v419_v57 = vld [vmem:[#allocation4 + $0x88] sm:$0xff]  ;;  %v953_v1 = vpack.c.bf16 %v833_v55, %v832_v53 }
  0x23   :  { %940 = vmatpush3.bf16.msra.mxu0 %v937_v20  ;;  %886 = vmatprep.mubr.msk.f32.mxu0 %vm34_vm0, %v62_v29  ;;  %v414_v51 = vld [vmem:[#allocation4 + $0x60] sm:$0xff]  ;;  %v421_v58 = vld [vmem:[#allocation4 + $0x98] sm:$0xff]  ;;  %v420_v61 = vld [vmem:[#allocation4 + $0x90] sm:$0xff] }
  0x24   :  { %942 = vmatprep.subr.bf16.mxu0 %v941_v28  ;;  %v1007_v56 = vpack.c.bf16 %v416_v54, %v414_v51  ;;  %v1009_v59 = vpack.c.bf16 %v421_v58, %v419_v57  ;;  %v418_v60 = vld [vmem:[#allocation4 + $0x80] sm:$0xff]  ;;  %v51_v62 = vld [vmem:[#allocation2 + $0x8] sm:$0xff]  ;;  %v52_v2 = vld [vmem:[#allocation2 + $0x18] sm:$0xff] }
  0x25   :  { %1004 = vmatpush1.bf16.msra.mxu1 %v1003_v47  ;;  %v423_v63 = vld [vmem:[#allocation4 + $0xa8] sm:$0xff]  ;;  %v425_v3 = vld [vmem:[#allocation4 + $0xb8] sm:$0xff]  ;;  %v834_v4 = vld [vmem:[%s1296_s1 + $0x80] sm:$0xff]  ;;  %v1011_v6 = vpack.c.bf16 %v420_v61, %v418_v60 }
  0x26   :  { %887 = vmatmul.mubr.msk.f32.gmra.mrb[2].mxu0 %vm34_vm0, %v63_v36  ;;  %1006 = vmatprep.subr.bf16.mxu1 %v1005_v50  ;;  %v835_v5 = vld [vmem:[%s1296_s1 + $0x88] sm:$0xff]  ;;  %v1013_v7 = vpack.c.bf16 %v425_v3, %v423_v63  ;;  %v53_v8 = vld [vmem:[#allocation2 + $0x20] sm:$0xff]  ;;  %v442_v12 = vld [vmem:[#allocation4 + $0x118] sm:$0xff] }
  0x27   :  { %944 = vmatpush3.bf16.msra.mxu0 %v941_v28  ;;  %901 = vmatprep.mubr.msk.f32.mxu0 %vm34_vm0, %v50_v40  ;;  %v957_v9 = vpack.c.bf16 %v835_v5, %v834_v4  ;;  %v265_v10 = vld [vmem:[#allocation2 + $0x2] sm:$0xff]  ;;  %v441_v15 = vld [vmem:[#allocation4 + $0x110] sm:$0xff]  ;;  %v446_v17 = vld [vmem:[#allocation4 + $0x138] sm:$0xff] }
  0x28   :  { %946 = vmatprep.subr.bf16.mxu0 %v945_v39  ;;  %v440_v11 = vld [vmem:[#allocation4 + $0x108] sm:$0xff]  ;;  %v439_v14 = vld [vmem:[#allocation4 + $0x100] sm:$0xff]  ;;  %v445_v23 = vld [vmem:[#allocation4 + $0x130] sm:$0xff] }
  0x29   :  { %1008 = vmatpush1.bf16.msra.mxu1 %v1007_v56  ;;  %v961_v13 = vpack.c.bf16 %v442_v12, %v440_v11  ;;  %v444_v16 = vld [vmem:[#allocation4 + $0x128] sm:$0xff]  ;;  %v963_v19 = vpack.c.bf16 %v441_v15, %v439_v14  ;;  %v267_v20 = vld [vmem:[#allocation2 + $0x1a] sm:$0xff]  ;;  %v449_v30 = vld [vmem:[#allocation4 + $0x150] sm:$0xff] }
  0x2a   :  { %1010 = vmatprep.subr.bf16.mxu1 %v1009_v59  ;;  %v266_v18 = vld [vmem:[#allocation2 + $0xa] sm:$0xff]  ;;  %v965_v21 = vpack.c.bf16 %v446_v17, %v444_v16  ;;  %v443_v22 = vld [vmem:[#allocation4 + $0x120] sm:$0xff]  ;;  %v450_v25 = vld [vmem:[#allocation4 + $0x158] sm:$0xff] }
  0x2b   :  { %948 = vmatpush3.bf16.msra.mxu0 %v945_v39  ;;  %v448_v24 = vld [vmem:[#allocation4 + $0x148] sm:$0xff]  ;;  %v967_v27 = vpack.c.bf16 %v445_v23, %v443_v22  ;;  %v447_v29 = vld [vmem:[#allocation4 + $0x140] sm:$0xff]  ;;  %v454_v32 = vld [vmem:[#allocation4 + $0x178] sm:$0xff] }
  0x2c   :  { %950 = vmatprep.subr.bf16.mxu0 %v949_v52  ;;  %v268_v26 = vld [vmem:[#allocation2 + $0x22] sm:$0xff]  ;;  %v969_v28 = vpack.c.bf16 %v450_v25, %v448_v24  ;;  %v971_v33 = vpack.c.bf16 %v449_v30, %v447_v29  ;;  %v453_v36 = vld [vmem:[#allocation4 + $0x170] sm:$0xff]  ;;  %v458_v38 = vld [vmem:[#allocation4 + $0x198] sm:$0xff] }
  0x2d   :  { %1012 = vmatpush1.bf16.msra.mxu1 %v1011_v6  ;;  %v452_v31 = vld [vmem:[#allocation4 + $0x168] sm:$0xff]  ;;  %v451_v35 = vld [vmem:[#allocation4 + $0x160] sm:$0xff]  ;;  %v457_v42 = vld [vmem:[#allocation4 + $0x190] sm:$0xff] }
  0x2e   :  { %902 = vmatmul.mubr.msk.f32.vlgmr.msra.gmra.mrb[0].mxu0 %vm34_vm0, %v51_v62  ;;  %1014 = vmatprep.subr.bf16.mxu1 %v1013_v7  ;;  %v973_v34 = vpack.c.bf16 %v454_v32, %v452_v31  ;;  %v456_v37 = vld [vmem:[#allocation4 + $0x188] sm:$0xff]  ;;  %v975_v39 = vpack.c.bf16 %v453_v36, %v451_v35  ;;  %v455_v41 = vld [vmem:[#allocation4 + $0x180] sm:$0xff]  ;;  %v462_v45 = vld [vmem:[#allocation4 + $0x1b8] sm:$0xff] }
  0x2f   :  { %952 = vmatpush3.bf16.msra.mxu0 %v949_v52  ;;  %904 = vmatprep.mubr.msk.f32.mxu0 %vm34_vm0, %v52_v2  ;;  %v977_v40 = vpack.c.bf16 %v458_v38, %v456_v37  ;;  %v979_v43 = vpack.c.bf16 %v457_v42, %v455_v41  ;;  %v460_v44 = vld [vmem:[#allocation4 + $0x1a8] sm:$0xff]  ;;  %v459_v47 = vld [vmem:[#allocation4 + $0x1a0] sm:$0xff]  ;;  %v461_v48 = vld [vmem:[#allocation4 + $0x1b0] sm:$0xff] }
  0x30   :  { %954 = vmatprep.subr.bf16.mxu0 %v953_v1  ;;  %v981_v46 = vpack.c.bf16 %v462_v45, %v460_v44  ;;  %v983_v49 = vpack.c.bf16 %v461_v48, %v459_v47  ;;  %v464_v50 = vld [vmem:[#allocation4 + $0x1c8] sm:$0xff]  ;;  %v466_v51 = vld [vmem:[#allocation4 + $0x1d8] sm:$0xff]  ;;  %v463_v53 = vld [vmem:[#allocation4 + $0x1c0] sm:$0xff] }
  0x31   :  { %v985_v52 = vpack.c.bf16 %v466_v51, %v464_v50  ;;  %v465_v54 = vld [vmem:[#allocation4 + $0x1d0] sm:$0xff]  ;;  %v422_v56 = vld [vmem:[#allocation4 + $0xa0] sm:$0xff]  ;;  %v468_v58 = vld [vmem:[#allocation4 + $0x1e8] sm:$0xff] }
  0x32   :  { %905 = vmatmul.mubr.msk.f32.gmra.mrb[2].mxu0 %vm34_vm0, %v53_v8  ;;  %v987_v55 = vpack.c.bf16 %v465_v54, %v463_v53  ;;  %v424_v57 = vld [vmem:[#allocation4 + $0xb0] sm:$0xff]  ;;  %v470_v60 = vld [vmem:[#allocation4 + $0x1f8] sm:$0xff]  ;;  %v467_v61 = vld [vmem:[#allocation4 + $0x1e0] sm:$0xff] }
  0x33   :  { %956 = vmatpush3.bf16.msra.mxu0 %v953_v1  ;;  %919 = vmatprep.mubr.msk.f32.mxu0 %vm34_vm0, %v265_v10  ;;  %v1015_v59 = vpack.c.bf16 %v424_v57, %v422_v56  ;;  %v469_v62 = vld [vmem:[#allocation4 + $0x1f0] sm:$0xff]  ;;  %v989_v63 = vpack.c.bf16 %v470_v60, %v468_v58  ;;  %v427_v2 = vld [vmem:[#allocation4 + $0xc8] sm:$0xff]  ;;  %v429_v3 = vld [vmem:[#allocation4 + $0xd8] sm:$0xff] }
  0x34   :  { %958 = vmatprep.subr.bf16.mxu0 %v957_v9  ;;  %v991_v1 = vpack.c.bf16 %v469_v62, %v467_v61  ;;  %v1017_v4 = vpack.c.bf16 %v429_v3, %v427_v2  ;;  %v426_v5 = vld [vmem:[#allocation4 + $0xc0] sm:$0xff]  ;;  %v428_v6 = vld [vmem:[#allocation4 + $0xd0] sm:$0xff]  ;;  %v431_v8 = vld [vmem:[#allocation4 + $0xe8] sm:$0xff] }
  0x35   :  { %1016 = vmatpush1.bf16.msra.mxu1 %v1015_v59  ;;  %v1019_v7 = vpack.c.bf16 %v428_v6, %v426_v5  ;;  %v430_v11 = vld [vmem:[#allocation4 + $0xe0] sm:$0xff]  ;;  %v432_v12 = vld [vmem:[#allocation4 + $0xf0] sm:$0xff]  ;;  %v655_v14 = vld [vmem:[#allocation4 + $0x208] sm:$0xff] }
  0x36   :  { %1018 = vmatprep.subr.bf16.mxu1 %v1017_v4  ;;  %v657_v15 = vld [vmem:[#allocation4 + $0x218] sm:$0xff]  ;;  %v840_v17 = vld [vmem:[%s1297_s2] ss:$0 sm:$0xff]  ;;  %v663_v35 = vld [vmem:[#allocation4 + $0x248] sm:$0xff] }
  0x37   :  { %960 = vmatpush3.bf16.msra.mxu0 %v957_v9  ;;  %v433_v9 = vld [vmem:[#allocation4 + $0xf8] sm:$0xff]  ;;  %v1025_v16 = vpack.c.bf16 %v657_v15, %v655_v14  ;;  %v658_v32 = vld [vmem:[#allocation4 + $0x220] sm:$0xff]  ;;  %v667_v42 = vld [vmem:[#allocation4 + $0x268] sm:$0xff] }
  0x38   :  { %962 = vmatprep.subr.bf16.mxu0 %v961_v13  ;;  %v1021_v10 = vpack.c.bf16 %v433_v9, %v431_v8  ;;  %v1023_v13 = vpack.c.bf16 %v432_v12, %v430_v11  ;;  %v661_v29 = vld [vmem:[#allocation4 + $0x238] sm:$0xff]  ;;  %v668_v47 = vld [vmem:[#allocation4 + $0x270] sm:$0xff]  ;;  %v670_v53 = vld [vmem:[#allocation4 + $0x280] sm:$0xff] }
  0x39   :  { %1020 = vmatpush1.bf16.msra.mxu1 %v1019_v7  ;;  %v665_v36 = vld [vmem:[#allocation4 + $0x258] sm:$0xff]  ;;  %v672_v54 = vld [vmem:[#allocation4 + $0x290] sm:$0xff]  ;;  %v675_v56 = vld [vmem:[#allocation4 + $0x2a8] sm:$0xff] }
  0x3a   :  { %920 = vmatmul.mubr.msk.f32.vlgmr.msra.gmra.mrb[0].mxu0 %vm34_vm0, %v266_v18  ;;  %1022 = vmatprep.subr.bf16.mxu1 %v1021_v10  ;;  %v1033_v38 = vpack.c.bf16 %v665_v36, %v663_v35  ;;  %v673_v50 = vld [vmem:[#allocation4 + $0x298] sm:$0xff]  ;;  %v1043_v58 = vpack.c.bf16 %v672_v54, %v670_v53  ;;  %v674_v60 = vld [vmem:[#allocation4 + $0x2a0] sm:$0xff]  ;;  %v676_v61 = vld [vmem:[#allocation4 + $0x2b0] sm:$0xff] }
  0x3b   :  { %922 = vmatprep.mubr.msk.f32.mxu0 %vm34_vm0, %v267_v20  ;;  %964 = vmatpush1.bf16.msra.mxu0 %v963_v19  ;;  %v677_v57 = vld [vmem:[#allocation4 + $0x2b8] sm:$0xff]  ;;  %v679_v62 = vld [vmem:[#allocation4 + $0x2c8] sm:$0xff]  ;;  %v678_v3 = vld [vmem:[#allocation4 + $0x2c0] sm:$0xff] }
  0x3c   :  { %966 = vmatprep.subr.bf16.mxu0 %v965_v21  ;;  %v1045_v59 = vpack.c.bf16 %v677_v57, %v675_v56  ;;  %v680_v4 = vld [vmem:[#allocation4 + $0x2d0] sm:$0xff]  ;;  %v683_v5 = vld [vmem:[#allocation4 + $0x2e8] sm:$0xff]  ;;  %v685_v6 = vld [vmem:[#allocation4 + $0x2f8] sm:$0xff] }
  0x3d   :  { %1024 = vmatpush1.bf16.msra.mxu1 %v1023_v13  ;;  %v1051_v7 = vpack.c.bf16 %v680_v4, %v678_v3  ;;  %v1053_v8 = vpack.c.bf16 %v685_v6, %v683_v5  ;;  %v682_v9 = vld [vmem:[#allocation4 + $0x2e0] sm:$0xff]  ;;  %v684_v10 = vld [vmem:[#allocation4 + $0x2f0] sm:$0xff] }
  0x3e   :  { %923 = vmatmul.mubr.msk.f32.gmra.mrb[2].mxu0 %vm34_vm0, %v268_v26  ;;  %1026 = vmatprep.subr.bf16.mxu1 %v1025_v16  ;;  %v654_v26 = vld [vmem:[#allocation4 + $0x200] sm:$0xff]  ;;  %v1055_v11 = vpack.c.bf16 %v684_v10, %v682_v9 }
  0x3f   :  { %968 = vmatpush1.bf16.msra.mxu0 %v967_v27  ;;  %535 = vmatprep.mubr.f32.mxu0 %v1112_v0  ;;  %v656_v27 = vld [vmem:[#allocation4 + $0x210] sm:$0xff] }
  0x40   :  { %970 = vmatprep.subr.bf16.mxu0 %v969_v28  ;;  %v659_v28 = vld [vmem:[#allocation4 + $0x228] sm:$0xff]  ;;  %v1027_v30 = vpack.c.bf16 %v656_v27, %v654_v26  ;;  %v783_v27 = vld [vmem:[%s1299_s4] sm:$0x3] }
  0x41   :  { %v1029_v31 = vpack.c.bf16 %v661_v29, %v659_v28 }
  0x43   :  { %972 = vmatpush1.bf16.msra.mxu0 %v971_v33  ;;  %v660_v33 = vld [vmem:[#allocation4 + $0x230] sm:$0xff] }
  0x44   :  { %974 = vmatprep.subr.bf16.mxu0 %v973_v34  ;;  %v1031_v37 = vpack.c.bf16 %v660_v33, %v658_v32 }
  0x47   :  { %976 = vmatpush1.bf16.msra.mxu0 %v975_v39  ;;  %v662_v39 = vld [vmem:[#allocation4 + $0x240] sm:$0xff] }
  0x48   :  { %978 = vmatprep.subr.bf16.mxu0 %v977_v40  ;;  %v664_v40 = vld [vmem:[#allocation4 + $0x250] sm:$0xff] }
  0x49   :  { %v1035_v44 = vpack.c.bf16 %v664_v40, %v662_v39 }
  0x4b   :  { %980 = vmatpush1.bf16.msra.mxu0 %v979_v43  ;;  %v669_v43 = vld [vmem:[#allocation4 + $0x278] sm:$0xff] }
  0x4c   :  { %982 = vmatprep.subr.bf16.mxu0 %v981_v46  ;;  %v1037_v45 = vpack.c.bf16 %v669_v43, %v667_v42  ;;  %v666_v46 = vld [vmem:[#allocation4 + $0x260] sm:$0xff] }
  0x4d   :  { %v1039_v51 = vpack.c.bf16 %v668_v47, %v666_v46 }
  0x4f   :  { %984 = vmatpush1.bf16.msra.mxu0 %v983_v49  ;;  %v671_v49 = vld [vmem:[#allocation4 + $0x288] sm:$0xff] }
  0x50   :  { %986 = vmatprep.subr.bf16.mxu0 %v985_v52  ;;  %v1041_v52 = vpack.c.bf16 %v673_v50, %v671_v49 }
  0x53   :  { %988 = vmatpush1.bf16.msra.mxu0 %v987_v55 }
  0x54   :  { %990 = vmatprep.subr.bf16.mxu0 %v989_v63  ;;  %v681_v63 = vld [vmem:[#allocation4 + $0x2d8] sm:$0xff] }
  0x55   :  { %v1049_v2 = vpack.c.bf16 %v681_v63, %v679_v62 }
  0x57   :  { %992 = vmatpush1.bf16.msra.mxu0 %v991_v1  ;;  %v1047_v1 = vpack.c.bf16 %v676_v61, %v674_v60 }
 0x10d   :  { %v921_v18 = vpop.f32.mrb[0].mxu0 }
 0x10e   :  { %v385_v19 = vadd.f32 %v921_v18, %v840_v17  ;;  %v354_v20 = vpop.f32.mrb[1].mxu0 }
 0x10f   :  { %v384_v21 = vadd.f32 %v840_v17, %v354_v20 }
 0x110   :  { %395 = vst [vmem:[#allocation3 + $0x9] sm:$0xff] %v385_v19 }
 0x111   :  { %394 = vst [vmem:[#allocation3 + $0x1] sm:$0xff] %v384_v21  ;;  %v924_v22 = vpop.f32.mrb[2].mxu0  ;;  %536 = vmatmul.mubr.f32.vlgmr.msra.gmra.mrb[4].mxu0 %v384_v21 }
 0x112   :  { %v387_v23 = vadd.f32 %v924_v22, %v840_v17  ;;  %v364_v24 = vpop.f32.mrb[3].mxu0  ;;  %541 = vmatprep.mubr.f32.mxu0 %v1112_v0 }
 0x113   :  { %v386_v25 = vadd.f32 %v840_v17, %v364_v24  ;;  %v785_v24 = vlaneseq }
 0x114   :  { %397 = vst [vmem:[#allocation3 + $0x21] sm:$0xff] %v387_v23 }
 0x115   :  { %396 = vst [vmem:[#allocation3 + $0x19] sm:$0xff] %v386_v25  ;;  %542 = vmatmul.mubr.f32.gmra.mrb[6].mxu0 %v385_v19 }
 0x116   :  { %547 = vmatprep.mubr.f32.mxu0 %v1112_v0 }
 0x117   :  { %v650_v13 = vld [vmem:[#allocation3 + $0xa] sm:$0xff] }
 0x118   :  { %v398_v34 = vld [vmem:[#allocation3] sm:$0xff]  ;;  %v399_v41 = vld [vmem:[#allocation3 + $0x8] sm:$0xff] }
 0x119   :  { %625 = vmatmul.mubr.f32.vlgmr.msra.gmra.mrb[0].mxu1 %v398_v34  ;;  %548 = vmatmul.mubr.f32.gmra.mrb[8].mxu0 %v386_v25  ;;  %v649_v12 = vld [vmem:[#allocation3 + $0x2] sm:$0xff]  ;;  %v786_v25 = vshrl.u32 %v785_v24, 7 }
 0x11a   :  { %1028 = vmatpush1.bf16.msra.mxu1 %v1027_v30  ;;  %630 = vmatprep.mubr.f32.mxu1 %v1112_v0 }
 0x11b   :  { %1030 = vmatprep.subr.bf16.mxu1 %v1029_v31  ;;  %553 = vmatprep.mubr.f32.mxu0 %v1112_v0  ;;  %v652_v15 = vld [vmem:[#allocation3 + $0x22] sm:$0xff]  ;;  %v787_v26 = vsub.s32 0, %v786_v25  ;;  %v791_v28 = vsub.s32 1, %v786_v25 }
 0x11c   :  { %v400_v48 = vld [vmem:[#allocation3 + $0x18] sm:$0xff]  ;;  %v401_v55 = vld [vmem:[#allocation3 + $0x20] sm:$0xff] }
 0x11d   :  { %631 = vmatmul.mubr.f32.gmra.mrb[2].mxu1 %v399_v41  ;;  %554 = vmatmul.mubr.f32.gmra.mrb[10].mxu0 %v387_v23  ;;  %v651_v14 = vld [vmem:[#allocation3 + $0x1a] sm:$0xff]  ;;  %v788_v29 = vrot.slane %v783_v27, %v787_v26  ;;  %v792_v30 = vrot.slane %v783_v27, %v791_v28 }
 0x11e   :  { %1032 = vmatpush1.bf16.msra.mxu1 %v1031_v37  ;;  %636 = vmatprep.mubr.f32.mxu1 %v1112_v0 }
 0x11f   :  { %1034 = vmatprep.subr.bf16.mxu1 %v1033_v38 }
 0x121   :  { %637 = vmatmul.mubr.f32.gmra.mrb[4].mxu1 %v400_v48 }
 0x122   :  { %1036 = vmatpush1.bf16.msra.mxu1 %v1035_v44  ;;  %642 = vmatprep.mubr.f32.mxu1 %v1112_v0 }
 0x123   :  { %1038 = vmatprep.subr.bf16.mxu1 %v1037_v45 }
 0x125   :  { %643 = vmatmul.mubr.f32.gmra.mrb[6].mxu1 %v401_v55 }
 0x126   :  { %1040 = vmatpush1.bf16.msra.mxu1 %v1039_v51  ;;  %750 = vmatprep.mubr.f32.mxu1 %v1112_v0 }
 0x127   :  { %1042 = vmatprep.subr.bf16.mxu1 %v1041_v52 }
 0x12a   :  { %1044 = vmatpush1.bf16.msra.mxu1 %v1043_v58 }
 0x12b   :  { %1046 = vmatprep.subr.bf16.mxu1 %v1045_v59 }
 0x12e   :  { %1048 = vmatpush1.bf16.msra.mxu1 %v1047_v1 }
 0x12f   :  { %1050 = vmatprep.subr.bf16.mxu1 %v1049_v2 }
 0x132   :  { %1052 = vmatpush1.bf16.msra.mxu1 %v1051_v7 }
 0x133   :  { %1054 = vmatprep.subr.bf16.mxu1 %v1053_v8 }
 0x136   :  { %1056 = vmatpush1.bf16.msra.mxu1 %v1055_v11 }
 0x139   :  { %751 = vmatmul.mubr.f32.vlgmr.msra.gmra.mrb[0].mxu1 %v649_v12 }
 0x13a   :  { %756 = vmatprep.mubr.f32.mxu1 %v1112_v0 }
 0x13d   :  { %757 = vmatmul.mubr.f32.gmra.mrb[2].mxu1 %v650_v13 }
 0x13e   :  { %762 = vmatprep.mubr.f32.mxu1 %v1112_v0 }
 0x141   :  { %763 = vmatmul.mubr.f32.gmra.mrb[4].mxu1 %v651_v14 }
 0x142   :  { %768 = vmatprep.mubr.f32.mxu1 %v1112_v0 }
 0x145   :  { %769 = vmatmul.mubr.f32.gmra.mrb[6].mxu1 %v652_v15 }
 0x1e4   :  { %v537_v16 = vpop.f32.mrb[4].mxu0 }
 0x1e5   :  { %v539_v17 = vpop.f32.mrb[5].mxu0 }
 0x1e8   :  { %v543_v18 = vpop.f32.mrb[6].mxu0 }
 0x1e9   :  { %v545_v19 = vpop.f32.mrb[7].mxu0 }
 0x1ec   :  { %v549_v20 = vpop.f32.mrb[8].mxu0 }
 0x1ed   :  { %v551_v21 = vpop.f32.mrb[9].mxu0 }
 0x1f0   :  { %v555_v22 = vpop.f32.mrb[10].mxu0 }
 0x1f1   :  { %v557_v23 = vpop.f32.mrb[11].mxu0 }
 0x20c   :  { %v752_v0 = vpop.f32.mrb[0].mxu1 }
 0x20d   :  { %v1057_v31 = vadd.f32 %v752_v0, %v537_v16  ;;  %v754_v32 = vpop.f32.mrb[1].mxu1 }
 0x20e   :  { %v1058_v33 = vadd.f32 %v754_v32, %v539_v17 }
 0x20f   :  { %v795_v34 = vadd.f32 %v1057_v31, %v788_v29 }
 0x210   :  { %v796_v35 = vadd.f32 %v1058_v33, %v792_v30  ;;  %v758_v36 = vpop.f32.mrb[2].mxu1 }
 0x211   :  { %803 = vst [vmem:[%s1300_s5] sm:$0xff] %v795_v34  ;;  %v1059_v37 = vadd.f32 %v758_v36, %v543_v18  ;;  %v760_v38 = vpop.f32.mrb[3].mxu1 }
 0x212   :  { %804 = vst [vmem:[%s1300_s5 + $0x8] sm:$0xff] %v796_v35  ;;  %v1060_v39 = vadd.f32 %v760_v38, %v545_v19 }
 0x213   :  { %v797_v40 = vadd.f32 %v1059_v37, %v788_v29 }
 0x214   :  { %v798_v41 = vadd.f32 %v1060_v39, %v792_v30  ;;  %v764_v42 = vpop.f32.mrb[4].mxu1 }
 0x215   :  { %805 = vst [vmem:[%s1300_s5 + $0x10] sm:$0xff] %v797_v40  ;;  %v1061_v43 = vadd.f32 %v764_v42, %v549_v20  ;;  %v766_v44 = vpop.f32.mrb[5].mxu1 }
 0x216   :  { %806 = vst [vmem:[%s1300_s5 + $0x18] sm:$0xff] %v798_v41  ;;  %v1062_v45 = vadd.f32 %v766_v44, %v551_v21 }
 0x217   :  { %v799_v46 = vadd.f32 %v1061_v43, %v788_v29 }
 0x218   :  { %v800_v47 = vadd.f32 %v1062_v45, %v792_v30  ;;  %v770_v48 = vpop.f32.mrb[6].mxu1 }
 0x219   :  { %807 = vst [vmem:[%s1300_s5 + $0x20] sm:$0xff] %v799_v46  ;;  %v1063_v49 = vadd.f32 %v770_v48, %v555_v22  ;;  %v772_v50 = vpop.f32.mrb[7].mxu1 }
 0x21a   :  { %808 = vst [vmem:[%s1300_s5 + $0x28] sm:$0xff] %v800_v47  ;;  %v1064_v51 = vadd.f32 %v772_v50, %v557_v23 }
 0x21b   :  { %v801_v52 = vadd.f32 %v1063_v49, %v788_v29 }
 0x21c   :  { %v802_v53 = vadd.f32 %v1064_v51, %v792_v30 }
 0x21d   :  { %809 = vst [vmem:[%s1300_s5 + $0x30] sm:$0xff] %v801_v52 }
 0x21e   :  { %810 = vst [vmem:[%s1300_s5 + $0x38] sm:$0xff] %v802_v53 }
 0x21f   :  { %815 = vsyncpa [#allocation5], 1 }

</bundles_post_ra>
